<compile_context>
chip_gen: v7x
topology: tpu7x:2x2x1
jax: 0.10.0
libtpu: 0.0.40
codegen_flags: <defaults>
</compile_context>

<pallas_src>
import functools

import jax
import jax.numpy as jnp
from jax.experimental import pallas as pl
from jax.experimental.pallas import tpu as pltpu


def _round_up(n, m):
    return ((n + m - 1) // m) * m


def _node_adding_kernel(inv_temp_ref,            # scalar prefetch, SMEM (1,)
                        x_ref, w1_ref, b1_ref, w2r_ref, b2_ref, u_ref,
                        o_ref):
    x = x_ref[...].astype(jnp.float32)                               # [tile_n, D]

    # MLP prob encoder: first layer on the MXU.
    h = jnp.dot(x, w1_ref[...], preferred_element_type=jnp.float32)  # [tile_n, H]
    h = jnp.maximum(h + b1_ref[...], 0.0)                            # ReLU

    # Second layer has output width 1 -> do it on the VPU/XLU (mul + lane reduce)
    # instead of a second MXU push with 1/128..1/256 utilization.
    logits = jnp.sum(h * w2r_ref[...], axis=-1, keepdims=True) + b2_ref[...]  # [tile_n, 1]

    # LearnableNodeAdding: log-sigmoid of the logits, then Gumbel-sigmoid gate.
    log_sig = jnp.log(jax.nn.sigmoid(logits))                        # [tile_n, 1]
    u = u_ref[...].astype(jnp.float32)
    gumbel = -jnp.log(-jnp.log(u))                                   # [tile_n, 1]
    poss = jax.nn.sigmoid((log_sig + gumbel) * inv_temp_ref[0])      # [tile_n, 1]

    # Gate the node features (broadcast over the feature dim).
    o_ref[...] = (x * poss).astype(o_ref.dtype)


def learnable_node_adding(x, edge_index, edge_weights, params, uni_rand,
                          temp=1.0, tile_n=2048):
    """params = dict(w1 [D,H], b1 [1,H], w2 [H,1], b2 [1,1]); uni_rand [N,1] in (0,1)."""
    N, D = x.shape
    H = params["w1"].shape[1]

    # Tile sizing: big tiles amortize per-grid-step overhead, but clamp to the
    # (padded) problem size; keep a multiple of 8 for the (8,128) block rule.
    tile_n = _round_up(min(tile_n, _round_up(N, 8)), 8)
    n_pad = _round_up(N, tile_n)
    if n_pad != N:
        x_p = jnp.pad(x, ((0, n_pad - N), (0, 0)))
        u_p = jnp.pad(uni_rand, ((0, n_pad - N), (0, 0)), constant_values=0.5)
    else:
        x_p, u_p = x, uni_rand

    num_tiles = pl.cdiv(n_pad, tile_n)

    w1 = params["w1"].astype(jnp.float32)                # [D, H]
    b1 = params["b1"].reshape(1, H).astype(jnp.float32)  # [1, H]
    w2_row = params["w2"].reshape(1, H).astype(jnp.float32)  # [1, H] row form
    b2 = params["b2"].reshape(1, 1).astype(jnp.float32)  # [1, 1]
    inv_temp = jnp.asarray([1.0 / float(temp)], dtype=jnp.float32)

    # VMEM budget: double-buffered x in/out + u, weights; stays well under the
    # v7x scoped default even with tile_n = 8192.
    bytes_per_tile = tile_n * (2 * D + 1) * 4
    vmem_limit = int(min(48 * 1024 * 1024, max(4 * 1024 * 1024, 4 * bytes_per_tile)))

    cost = pl.CostEstimate(
        flops=2 * N * D * H + 3 * N * H + 2 * N * D,
        transcendentals=5 * N,
        bytes_accessed=2 * N * D * x.dtype.itemsize + N * 4 + (D * H + 2 * H + 1) * 4,
    )

    grid_spec = pltpu.PrefetchScalarGridSpec(
        num_scalar_prefetch=1,          # inv_temp lands in SMEM
        grid=(num_tiles,),
        in_specs=[
            pl.BlockSpec((tile_n, D), lambda i, s: (i, 0)),   # x tile
            pl.BlockSpec((D, H), lambda i, s: (0, 0)),        # w1 (resident)
            pl.BlockSpec((1, H), lambda i, s: (0, 0)),        # b1 (resident)
            pl.BlockSpec((1, H), lambda i, s: (0, 0)),        # w2 row (resident)
            pl.BlockSpec((1, 1), lambda i, s: (0, 0)),        # b2 (resident)
            pl.BlockSpec((tile_n, 1), lambda i, s: (i, 0)),   # uniform noise tile
        ],
        out_specs=pl.BlockSpec((tile_n, D), lambda i, s: (i, 0)),
    )

    x_out_p = pl.pallas_call(
        _node_adding_kernel,
        out_shape=jax.ShapeDtypeStruct((n_pad, D), x.dtype),
        grid_spec=grid_spec,
        compiler_params=pltpu.CompilerParams(
            dimension_semantics=("parallel",),
            vmem_limit_bytes=vmem_limit,
        ),
        cost_estimate=cost,
    )(inv_temp, x_p, w1, b1, w2_row, b2, u_p)

    x_out = x_out_p[:N] if n_pad != N else x_out_p
    # Graph(x=x, edge_index=edge_index, edge_weights=edge_weights).unfold()
    return x_out, edge_index, edge_weights


def _reference(x, params, uni_rand, temp):
    h = jnp.maximum(x @ params["w1"] + params["b1"], 0.0)
    logits = h @ params["w2"] + params["b2"]
    log_sig = jnp.log(jax.nn.sigmoid(logits))
    gumbel = -jnp.log(-jnp.log(uni_rand))
    poss = jax.nn.sigmoid((log_sig + gumbel) / temp)
    return x * poss


if __name__ == "__main__":
    key = jax.random.PRNGKey(0)
    N, D, H = 64, 32, 32      # nodes, input_dim, hidden_dim
    temp = 0.5

    k_x, k_w1, k_b1, k_w2, k_b2, k_u = jax.random.split(key, 6)

    x = jax.random.normal(k_x, (N, D), dtype=jnp.float32)

    # Deterministic "nn.Linear"-style init (uniform in +/- 1/sqrt(fan_in)),
    # stored pre-transposed for row-major matmuls inside the kernel.
    bound1 = 1.0 / (D ** 0.5)
    bound2 = 1.0 / (H ** 0.5)
    params = {
        "w1": jax.random.uniform(k_w1, (D, H), jnp.float32, -bound1, bound1),
        "b1": jax.random.uniform(k_b1, (1, H), jnp.float32, -bound1, bound1),
        "w2": jax.random.uniform(k_w2, (H, 1), jnp.float32, -bound2, bound2),
        "b2": jax.random.uniform(k_b2, (1, 1), jnp.float32, -bound2, bound2),
    }

    # torch.rand analogue, generated deterministically in-script (strictly in (0,1)).
    uni_rand = jax.random.uniform(
        k_u, (N, 1), jnp.float32, minval=1e-6, maxval=1.0 - 1e-6
    )

    # Dummy graph connectivity passed through unchanged.
    edge_index = jnp.stack(
        [jnp.arange(N, dtype=jnp.int32), (jnp.arange(N, dtype=jnp.int32) + 1) % N]
    )
    edge_weights = jnp.ones((N,), dtype=jnp.float32)

    x_out, ei_out, ew_out = learnable_node_adding(
        x, edge_index, edge_weights, params, uni_rand, temp=temp
    )
    jax.block_until_ready(x_out)

    ref = _reference(x, params, uni_rand, temp)
    assert x_out.shape == (N, D)
    assert jnp.allclose(x_out, ref, atol=1e-5, rtol=1e-5), "mismatch vs reference"
    assert (ei_out == edge_index).all() and jnp.allclose(ew_out, edge_weights)

    print("KERNEL_OK")
</pallas_src>

<mosaic_0001>
module attributes {stable_mosaic.version = 11 : i64} {
  func.func @_node_adding_kernel(%arg0: i32, %arg1: memref<1xf32, #tpu.memory_space<smem>>, %arg2: memref<64x32xf32, #tpu.memory_space<vmem>>, %arg3: memref<32x32xf32, #tpu.memory_space<vmem>>, %arg4: memref<1x32xf32, #tpu.memory_space<vmem>>, %arg5: memref<1x32xf32, #tpu.memory_space<vmem>>, %arg6: memref<1x1xf32, #tpu.memory_space<vmem>>, %arg7: memref<64x1xf32, #tpu.memory_space<vmem>>, %arg8: memref<64x32xf32, #tpu.memory_space<vmem>>) attributes {dimension_semantics = [#tpu.dimension_semantics<parallel>], iteration_bounds = array<i64: 1>, scalar_prefetch = 1 : i64, scratch_operands = 0 : i64, tpu.core_type = #tpu.core_type<tc>, window_params = [{transform_indices = @transform_0, window_bounds = array<i64: 64, 32>}, {pipeline_mode = #tpu.pipeline_mode<synchronous>, transform_indices = @transform_1, window_bounds = array<i64: 32, 32>}, {pipeline_mode = #tpu.pipeline_mode<synchronous>, transform_indices = @transform_2, window_bounds = array<i64: 1, 32>}, {pipeline_mode = #tpu.pipeline_mode<synchronous>, transform_indices = @transform_3, window_bounds = array<i64: 1, 32>}, {pipeline_mode = #tpu.pipeline_mode<synchronous>, transform_indices = @transform_4, window_bounds = array<i64: 1, 1>}, {transform_indices = @transform_5, window_bounds = array<i64: 64, 1>}, {transform_indices = @transform_6, window_bounds = array<i64: 64, 32>}]} {
    %c0 = arith.constant 0 : index
    %c0_0 = arith.constant 0 : index
    %0 = vector.load %arg2[%c0, %c0_0] : memref<64x32xf32, #tpu.memory_space<vmem>>, vector<64x32xf32>
    %c0_1 = arith.constant 0 : index
    %c0_2 = arith.constant 0 : index
    %1 = vector.load %arg3[%c0_1, %c0_2] : memref<32x32xf32, #tpu.memory_space<vmem>>, vector<32x32xf32>
    %cst = arith.constant dense<0.000000e+00> : vector<64x32xf32>
    %2 = tpu.matmul %0, %1, %cst {dimension_numbers = #tpu.dot_dimension_numbers<[1], [0], [0], [1], [0, 0, 1, 1], [], []>} : vector<64x32xf32>, vector<32x32xf32>, vector<64x32xf32> -> vector<64x32xf32>
    %c0_3 = arith.constant 0 : index
    %c0_4 = arith.constant 0 : index
    %3 = vector.load %arg4[%c0_3, %c0_4] : memref<1x32xf32, #tpu.memory_space<vmem>>, vector<1x32xf32>
    %4 = vector.broadcast %3 : vector<1x32xf32> to vector<64x32xf32>
    %5 = arith.addf %2, %4 : vector<64x32xf32>
    %cst_5 = arith.constant 0.000000e+00 : f32
    %6 = vector.broadcast %cst_5 : f32 to vector<64x32xf32>
    %7 = arith.maximumf %5, %6 : vector<64x32xf32>
    %c0_6 = arith.constant 0 : index
    %c0_7 = arith.constant 0 : index
    %8 = vector.load %arg5[%c0_6, %c0_7] : memref<1x32xf32, #tpu.memory_space<vmem>>, vector<1x32xf32>
    %9 = vector.broadcast %8 : vector<1x32xf32> to vector<64x32xf32>
    %10 = arith.mulf %7, %9 : vector<64x32xf32>
    %cst_8 = arith.constant dense<0.000000e+00> : vector<64xf32>
    %11 = vector.multi_reduction <add>, %10, %cst_8 [1] : vector<64x32xf32> to vector<64xf32>
    %12 = vector.shape_cast %11 : vector<64xf32> to vector<64x1xf32>
    %c0_9 = arith.constant 0 : index
    %c0_10 = arith.constant 0 : index
    %13 = vector.load %arg6[%c0_9, %c0_10] : memref<1x1xf32, #tpu.memory_space<vmem>>, vector<1x1xf32>
    %14 = vector.broadcast %13 : vector<1x1xf32> to vector<64x1xf32>
    %15 = arith.addf %12, %14 : vector<64x1xf32>
    %16 = arith.negf %15 : vector<64x1xf32>
    %17 = math.exp %16 : vector<64x1xf32>
    %cst_11 = arith.constant 1.000000e+00 : f32
    %18 = vector.broadcast %cst_11 : f32 to vector<64x1xf32>
    %19 = arith.addf %18, %17 : vector<64x1xf32>
    %20 = arith.divf %18, %19 : vector<64x1xf32>
    %21 = math.log %20 : vector<64x1xf32>
    %c0_12 = arith.constant 0 : index
    %c0_13 = arith.constant 0 : index
    %22 = vector.load %arg7[%c0_12, %c0_13] : memref<64x1xf32, #tpu.memory_space<vmem>>, vector<64x1xf32>
    %23 = math.log %22 : vector<64x1xf32>
    %cst_14 = arith.constant 0.000000e+00 : f32
    %24 = vector.broadcast %cst_14 : f32 to vector<64x1xf32>
    %25 = arith.subf %24, %23 : vector<64x1xf32>
    %26 = math.log %25 : vector<64x1xf32>
    %cst_15 = arith.constant 0.000000e+00 : f32
    %27 = vector.broadcast %cst_15 : f32 to vector<64x1xf32>
    %28 = arith.subf %27, %26 : vector<64x1xf32>
    %29 = arith.addf %21, %28 : vector<64x1xf32>
    %c0_16 = arith.constant 0 : index
    %30 = memref.load %arg1[%c0_16] : memref<1xf32, #tpu.memory_space<smem>>
    %31 = vector.broadcast %30 : f32 to vector<64x1xf32>
    %32 = arith.mulf %29, %31 : vector<64x1xf32>
    %33 = arith.negf %32 : vector<64x1xf32>
    %34 = math.exp %33 : vector<64x1xf32>
    %cst_17 = arith.constant 1.000000e+00 : f32
    %35 = vector.broadcast %cst_17 : f32 to vector<64x1xf32>
    %36 = arith.addf %35, %34 : vector<64x1xf32>
    %37 = arith.divf %35, %36 : vector<64x1xf32>
    %38 = vector.broadcast %37 : vector<64x1xf32> to vector<64x32xf32>
    %39 = arith.mulf %0, %38 : vector<64x32xf32>
    %c0_18 = arith.constant 0 : index
    %c0_19 = arith.constant 0 : index
    %40 = vector.load %arg8[%c0_18, %c0_19] : memref<64x32xf32, #tpu.memory_space<vmem>>, vector<64x32xf32>
    tpu.vector_store %arg8[%c0_18, %c0_19], %39 {strides = array<i32>} : memref<64x32xf32, #tpu.memory_space<vmem>>, vector<64x32xf32>,
    return
  }
  func.func @transform_0(%arg0: i32, %arg1: memref<1xf32, #tpu.memory_space<smem>>) -> (i32, i32) {
    %c0_i32 = arith.constant 0 : i32
    %c0_i32_0 = arith.constant 0 : i32
    return %arg0, %c0_i32 : i32, i32
  }
  func.func @transform_1(%arg0: i32, %arg1: memref<1xf32, #tpu.memory_space<smem>>) -> (i32, i32) {
    %c0_i32 = arith.constant 0 : i32
    %c0_i32_0 = arith.constant 0 : i32
    %c0_i32_1 = arith.constant 0 : i32
    return %c0_i32, %c0_i32_0 : i32, i32
  }
  func.func @transform_2(%arg0: i32, %arg1: memref<1xf32, #tpu.memory_space<smem>>) -> (i32, i32) {
    %c0_i32 = arith.constant 0 : i32
    %c0_i32_0 = arith.constant 0 : i32
    %c0_i32_1 = arith.constant 0 : i32
    return %c0_i32, %c0_i32_0 : i32, i32
  }
  func.func @transform_3(%arg0: i32, %arg1: memref<1xf32, #tpu.memory_space<smem>>) -> (i32, i32) {
    %c0_i32 = arith.constant 0 : i32
    %c0_i32_0 = arith.constant 0 : i32
    %c0_i32_1 = arith.constant 0 : i32
    return %c0_i32, %c0_i32_0 : i32, i32
  }
  func.func @transform_4(%arg0: i32, %arg1: memref<1xf32, #tpu.memory_space<smem>>) -> (i32, i32) {
    %c0_i32 = arith.constant 0 : i32
    %c0_i32_0 = arith.constant 0 : i32
    %c0_i32_1 = arith.constant 0 : i32
    return %c0_i32, %c0_i32_0 : i32, i32
  }
  func.func @transform_5(%arg0: i32, %arg1: memref<1xf32, #tpu.memory_space<smem>>) -> (i32, i32) {
    %c0_i32 = arith.constant 0 : i32
    %c0_i32_0 = arith.constant 0 : i32
    return %arg0, %c0_i32 : i32, i32
  }
  func.func @transform_6(%arg0: i32, %arg1: memref<1xf32, #tpu.memory_space<smem>>) -> (i32, i32) {
    %c0_i32 = arith.constant 0 : i32
    %c0_i32_0 = arith.constant 0 : i32
    return %arg0, %c0_i32 : i32, i32
  }
}

</mosaic_0001>

<bundles_post_ra>
// kernel: tpu_custom_call.1
= control target key start
LH: loop header
LB: loop body
LE: loop exit
PB: predicated region body
PF: predicated region fallthrough
CT: control target
= control target key end

     0   :  { %vm46_vm0 = vcmask 261120   ;;  %v670_v57 = vmov 0   ;;  %s863_s2 = inlined_call_operand.vmem [shape: f32[32,32], index: 2, kind: input, shape index: {}]   ;;  %s864_s1 = inlined_call_operand.vmem [shape: f32[64,32], index: 1, kind: input, shape index: {}]   ;;  %s865_s5 = inlined_call_operand.<no memory space> [shape: f32[1,1], index: 5, kind: input, shape index: {}]   ;;  %s866_s3 = inlined_call_operand.vmem [shape: f32[1,32], index: 3, kind: input, shape index: {}]   ;;  %s867_s4 = inlined_call_operand.vmem [shape: f32[1,32], index: 4, kind: input, shape index: {}]   ;;  %s868_s6 = inlined_call_operand.vmem [shape: f32[64,1], index: 6, kind: input, shape index: {}]   ;;  %s869_s0 = inlined_call_operand.<no memory space> [shape: f32[1], index: 0, kind: input, shape index: {}]   ;;  %s870_s7 = inlined_call_operand.vmem [shape: f32[64,32], index: 7, kind: output, shape index: {}]  }
   0x1   :  { %v35_v0 = vld [vmem:[%s863_s2] sm:$0xff]  ;;  %v36_v1 = vld [vmem:[%s863_s2 + $0x8] sm:$0xff]  ;;  %v37_v2 = vld [vmem:[%s863_s2 + $0x10] sm:$0xff]  ;;  %v13_v14 = vstv %s865_s5  ;;  %557 = vset.pattern.permute.xlu1 %v670_v57  ;;  %556 = vset.pattern.permute.xlu0 %v670_v57 }
   0x2   :  { %v543_v3 = vpack.c.bf16 %v36_v1, %v35_v0  ;;  %v38_v4 = vld [vmem:[%s863_s2 + $0x18] sm:$0xff]  ;;  %v726_v5 = vld [vmem:[%s864_s1] sm:$0xff]  ;;  %v740_v8 = vld [vmem:[%s864_s1 + $0x8] sm:$0xff]  ;;  %14 = vst [vmem:[#allocation4] sm:$0x1] %v13_v14 }
   0x3   :  { %v547_v6 = vpack.c.bf16 %v38_v4, %v37_v2  ;;  %531 = vmatprep.mubr.msk.f32.mxu0 %vm46_vm0, %v726_v5  ;;  %v733_v7 = vld [vmem:[%s864_s1 + $0x20] sm:$0xff]  ;;  %v745_v9 = vld [vmem:[%s864_s1 + $0x28] sm:$0xff]  ;;  %v750_v10 = vld [vmem:[%s864_s1 + $0x10] sm:$0xff] }
   0x4   :  { %544 = vmatprep.subr.bf16.mxu0 %v543_v3  ;;  %551 = vmatprep.subr.bf16.mxu1 %v543_v3  ;;  %v755_v11 = vld [vmem:[%s864_s1 + $0x30] sm:$0xff]  ;;  %v766_v12 = vld [vmem:[%s864_s1 + $0x18] sm:$0xff]  ;;  %v484_v15 = vld [vmem:[%s866_s3] ss:$0 sm:$0xff] }
   0x5   :  { %546 = vmatpush3.bf16.msra.mxu0 %v543_v3  ;;  %553 = vmatpush3.bf16.msra.mxu1 %v543_v3  ;;  %v773_v13 = vld [vmem:[%s864_s1 + $0x38] sm:$0xff]  ;;  %v493_v24 = vld [vmem:[%s867_s4] ss:$0 sm:$0xff]  ;;  %v303_v58 = vld [vmem:[%s868_s6 + $0x8] sm:$0xff] }
   0x6   :  { %548 = vmatprep.subr.bf16.mxu0 %v547_v6  ;;  %552 = vmatprep.subr.bf16.mxu1 %v547_v6  ;;  %558 = vlog2.f32 %v303_v58  ;;  %v307_v59 = vld [vmem:[%s868_s6 + $0x28] sm:$0xff]  ;;  %v302_v60 = vld [vmem:[%s868_s6] sm:$0xff]  ;;  %v305_v4 = vld [vmem:[%s868_s6 + $0x18] sm:$0xff] }
   0x7   :  { %537 = vmatprep.mubr.msk.f32.mxu1 %vm46_vm0, %v733_v7  ;;  %560 = vlog2.f32 %v307_v59  ;;  %v306_v0 = vld [vmem:[%s868_s6 + $0x20] sm:$0xff] }
   0x8   :  { %562 = vlog2.f32 %v302_v60 }
   0x9   :  { %550 = vmatpush3.bf16.msra.mxu0 %v547_v6  ;;  %554 = vmatpush3.bf16.msra.mxu1 %v547_v6  ;;  %v494_v61 = vld [vmem:[#allocation4] ss:$0 sm:$0xff]  ;;  %564 = vlog2.f32 %v306_v0 }
   0xa   :  { %566 = vlog2.f32 %v305_v4 }
   0xc   :  { %532 = vmatmul.mubr.msk.f32.vlgmr.msra.gmra.mrb[0].mxu0 %vm46_vm0, %v740_v8  ;;  %538 = vmatmul.mubr.msk.f32.vlgmr.msra.gmra.mrb[0].mxu1 %vm46_vm0, %v745_v9 }
   0xd   :  { %534 = vmatprep.mubr.msk.f32.mxu0 %vm46_vm0, %v750_v10  ;;  %540 = vmatprep.mubr.msk.f32.mxu1 %vm46_vm0, %v755_v11 }
  0x10   :  { %535 = vmatmul.mubr.msk.f32.gmra.mrb[2].mxu0 %vm46_vm0, %v766_v12  ;;  %541 = vmatmul.mubr.msk.f32.gmra.mrb[2].mxu1 %vm46_vm0, %v773_v13  ;;  %v559_v1 = vpop.eup %558 }
  0xdf   :  { %v533_v16 = vpop.f32.mrb[0].mxu0  ;;  %v539_v17 = vpop.f32.mrb[0].mxu1 }
  0xe0   :  { %v143_v18 = vadd.f32 %v533_v16, %v484_v15  ;;  %v137_v19 = vpop.f32.mrb[1].mxu0  ;;  %v163_v20 = vadd.f32 %v539_v17, %v484_v15  ;;  %v157_v21 = vpop.f32.mrb[1].mxu1 }
  0xe1   :  { %v138_v22 = vadd.f32 %v484_v15, %v137_v19  ;;  %v158_v23 = vadd.f32 %v484_v15, %v157_v21  ;;  %v561_v19 = vpop.eup %560 }
  0xe2   :  { %v177_v25 = vmax.f32 %v143_v18, 0.0  ;;  %v181_v26 = vmax.f32 %v163_v20, 0.0  ;;  %v304_v18 = vld [vmem:[%s868_s6 + $0x10] sm:$0xff] }
  0xe3   :  { %v176_v27 = vmax.f32 %v138_v22, 0.0  ;;  %v536_v28 = vpop.f32.mrb[2].mxu0  ;;  %v542_v29 = vpop.f32.mrb[2].mxu1  ;;  %v180_v36 = vmax.f32 %v158_v23, 0.0 }
  0xe4   :  { %v192_v30 = vmul.f32 %v493_v24, %v177_v25  ;;  %v153_v31 = vadd.f32 %v536_v28, %v484_v15  ;;  %v196_v32 = vmul.f32 %v493_v24, %v181_v26  ;;  %v147_v33 = vpop.f32.mrb[3].mxu0  ;;  %v173_v34 = vadd.f32 %v542_v29, %v484_v15  ;;  %v167_v35 = vpop.f32.mrb[3].mxu1  ;;  %v309_v28 = vld [vmem:[%s868_s6 + $0x38] sm:$0xff] }
  0xe5   :  { %v148_v37 = vadd.f32 %v484_v15, %v147_v33  ;;  %v168_v38 = vadd.f32 %v484_v15, %v167_v35  ;;  %v191_v42 = vmul.f32 %v493_v24, %v176_v27  ;;  %v195_v50 = vmul.f32 %v493_v24, %v180_v36  ;;  %v308_v36 = vld [vmem:[%s868_s6 + $0x30] sm:$0xff] }
  0xe6   :  { %v202_v39 = vsel %vm46_vm0, %v192_v30, 0.0  ;;  %v179_v40 = vmax.f32 %v153_v31, 0.0  ;;  %v214_v41 = vsel %vm46_vm0, %v196_v32, 0.0  ;;  %v183_v45 = vmax.f32 %v173_v34, 0.0  ;;  %v563_v31 = vpop.eup %562 }
  0xe7   :  { %203 = vadd.xlane.f32.xlu0 %v202_v39  ;;  %215 = vadd.xlane.f32.xlu1 %v214_v41  ;;  %v178_v43 = vmax.f32 %v148_v37, 0.0  ;;  %v182_v46 = vmax.f32 %v168_v38, 0.0  ;;  %v199_v48 = vsel %vm46_vm0, %v191_v42, 0.0  ;;  %v211_v54 = vsel %vm46_vm0, %v195_v50, 0.0  ;;  %v565_v38 = vpop.eup %564 }
  0xe8   :  { %v194_v44 = vmul.f32 %v493_v24, %v179_v40  ;;  %v198_v52 = vmul.f32 %v493_v24, %v183_v45  ;;  %v313_v15 = vmul.f32 0.6931472, %v559_v1  ;;  %v321_v25 = vmul.f32 0.6931472, %v561_v19  ;;  %v567_v42 = vpop.eup %566 }
  0xe9   :  { %v193_v47 = vmul.f32 %v493_v24, %v178_v43  ;;  %v197_v53 = vmul.f32 %v493_v24, %v182_v46  ;;  %v311_v39 = vmul.f32 0.6931472, %v563_v31 }
  0xea   :  { %v208_v49 = vsel %vm46_vm0, %v194_v44, 0.0  ;;  %v220_v55 = vsel %vm46_vm0, %v198_v52, 0.0  ;;  %v327_v24 = vsub.f32 0.0, %v313_v15  ;;  %v331_v34 = vsub.f32 0.0, %v321_v25 }
  0xeb   :  { %200 = vadd.xlane.f32.xlu0 %v199_v48  ;;  %209 = vadd.xlane.f32.xlu1 %v208_v49  ;;  %v205_v51 = vsel %vm46_vm0, %v193_v47, 0.0  ;;  %v217_v56 = vsel %vm46_vm0, %v197_v53, 0.0  ;;  %v319_v47 = vmul.f32 0.6931472, %v565_v38  ;;  %v317_v52 = vmul.f32 0.6931472, %v567_v42 }
  0xed   :  { %v329_v59 = vsub.f32 0.0, %v317_v52 }
  0xef   :  { %212 = vadd.xlane.f32.xlu0 %v211_v54  ;;  %206 = vadd.xlane.f32.xlu1 %v205_v51  ;;  %v326_v51 = vsub.f32 0.0, %v311_v39 }
  0xf3   :  { %221 = vadd.xlane.f32.xlu1 %v220_v55  ;;  %218 = vadd.xlane.f32.xlu0 %v217_v56  ;;  %v330_v56 = vsub.f32 0.0, %v319_v47 }
 0x174   :  { %v204_v62 = vpop.xlane.xlu0 %203  ;;  %v216_v63 = vpop.xlane.xlu1 %215 }
 0x175   :  { %v231_v2 = vadd.f32 %v494_v61, %v204_v62  ;;  %v235_v3 = vadd.f32 %v494_v61, %v216_v63 }
 0x177   :  { %v496_v6 = vmul.f32 -1.442695, %v231_v2  ;;  %v500_v14 = vmul.f32 -1.442695, %v235_v3 }
 0x178   :  { %v201_v16 = vpop.xlane.xlu0 %200  ;;  %v210_v17 = vpop.xlane.xlu1 %209 }
 0x179   :  { %568 = vpow2.f32 %v496_v6  ;;  %v230_v20 = vadd.f32 %v494_v61, %v201_v16  ;;  %v233_v21 = vadd.f32 %v494_v61, %v210_v17 }
 0x17a   :  { %570 = vpow2.f32 %v500_v14 }
 0x17b   :  { %v495_v22 = vmul.f32 -1.442695, %v230_v20  ;;  %v498_v23 = vmul.f32 -1.442695, %v233_v21  ;;  %572 = vlog2.f32 %v304_v18 }
 0x17c   :  { %v213_v26 = vpop.xlane.xlu0 %212  ;;  %v207_v27 = vpop.xlane.xlu1 %206 }
 0x17d   :  { %574 = vpow2.f32 %v495_v22  ;;  %v234_v29 = vadd.f32 %v494_v61, %v213_v26  ;;  %v232_v30 = vadd.f32 %v494_v61, %v207_v27 }
 0x17e   :  { %576 = vpow2.f32 %v498_v23 }
 0x17f   :  { %v499_v32 = vmul.f32 -1.442695, %v234_v29  ;;  %v497_v33 = vmul.f32 -1.442695, %v232_v30  ;;  %578 = vlog2.f32 %v309_v28 }
 0x180   :  { %580 = vlog2.f32 %v327_v24  ;;  %v222_v35 = vpop.xlane.xlu1 %221  ;;  %v219_v37 = vpop.xlane.xlu0 %218 }
 0x181   :  { %582 = vpow2.f32 %v499_v32  ;;  %v237_v40 = vadd.f32 %v494_v61, %v222_v35  ;;  %v236_v41 = vadd.f32 %v494_v61, %v219_v37 }
 0x182   :  { %584 = vpow2.f32 %v497_v33 }
 0x183   :  { %v569_v43 = vpop.eup %568  ;;  %v502_v44 = vmul.f32 -1.442695, %v237_v40  ;;  %586 = vlog2.f32 %v308_v36  ;;  %v501_v48 = vmul.f32 -1.442695, %v236_v41  ;;  %v367_v41 = vstv %s869_s0 }
 0x184   :  { %v571_v45 = vpop.eup %570  ;;  %v263_v46 = vadd.f32 1.0, %v569_v43  ;;  %588 = vlog2.f32 %v331_v34 }
 0x185   :  { %v573_v49 = vpop.eup %572  ;;  %v267_v50 = vadd.f32 1.0, %v571_v45  ;;  %590 = vpow2.f32 %v502_v44 }
 0x186   :  { %592 = vrcp.f32 %v263_v46  ;;  %v315_v57 = vmul.f32 0.6931472, %v573_v49 }
 0x187   :  { %v575_v53 = vpop.eup %574  ;;  %594 = vrcp.f32 %v267_v50 }
 0x188   :  { %v577_v54 = vpop.eup %576  ;;  %v262_v55 = vadd.f32 1.0, %v575_v53  ;;  %596 = vpow2.f32 %v501_v48  ;;  %v328_v1 = vsub.f32 0.0, %v315_v57 }
 0x189   :  { %v579_v58 = vpop.eup %578  ;;  %598 = vlog2.f32 %v326_v51  ;;  %v265_v60 = vadd.f32 1.0, %v577_v54 }
 0x18a   :  { %v581_v61 = vpop.eup %580  ;;  %600 = vrcp.f32 %v262_v55  ;;  %v325_v2 = vmul.f32 0.6931472, %v579_v58 }
 0x18b   :  { %v583_v62 = vpop.eup %582  ;;  %602 = vrcp.f32 %v265_v60  ;;  %v337_v27 = vmul.f32 0.6931472, %v581_v61 }
 0x18c   :  { %v585_v63 = vpop.eup %584  ;;  %604 = vlog2.f32 %v330_v56  ;;  %v266_v0 = vadd.f32 1.0, %v583_v62  ;;  %v333_v16 = vsub.f32 0.0, %v325_v2 }
 0x18d   :  { %v587_v3 = vpop.eup %586  ;;  %606 = vlog2.f32 %v329_v59  ;;  %v264_v4 = vadd.f32 1.0, %v585_v63  ;;  %v351_v33 = vsub.f32 0.0, %v337_v27 }
 0x18e   :  { %v589_v6 = vpop.eup %588  ;;  %608 = vrcp.f32 %v266_v0  ;;  %v323_v18 = vmul.f32 0.6931472, %v587_v3 }
 0x18f   :  { %v591_v14 = vpop.eup %590  ;;  %610 = vrcp.f32 %v264_v4  ;;  %v345_v29 = vmul.f32 0.6931472, %v589_v6 }
 0x190   :  { %v593_v15 = vpop.eup %592  ;;  %612 = vlog2.f32 %v328_v1  ;;  %v269_v17 = vadd.f32 1.0, %v591_v14  ;;  %v332_v24 = vsub.f32 0.0, %v323_v18 }
 0x191   :  { %v595_v19 = vpop.eup %594  ;;  %614 = vlog2.f32 %v593_v15  ;;  %v355_v36 = vsub.f32 0.0, %v345_v29 }
 0x192   :  { %v597_v20 = vpop.eup %596  ;;  %616 = vlog2.f32 %v595_v19 }
 0x193   :  { %v599_v21 = vpop.eup %598  ;;  %618 = vrcp.f32 %v269_v17  ;;  %v268_v22 = vadd.f32 1.0, %v597_v20 }
 0x194   :  { %v601_v23 = vpop.eup %600  ;;  %620 = vlog2.f32 %v333_v16  ;;  %v335_v34 = vmul.f32 0.6931472, %v599_v21 }
 0x195   :  { %v603_v25 = vpop.eup %602  ;;  %622 = vlog2.f32 %v601_v23 }
 0x196   :  { %v605_v26 = vpop.eup %604  ;;  %624 = vlog2.f32 %v603_v25  ;;  %v350_v45 = vsub.f32 0.0, %v335_v34 }
 0x197   :  { %v607_v28 = vpop.eup %606  ;;  %626 = vrcp.f32 %v268_v22  ;;  %v343_v46 = vmul.f32 0.6931472, %v605_v26 }
 0x198   :  { %v609_v30 = vpop.eup %608  ;;  %628 = vlog2.f32 %v332_v24  ;;  %v341_v37 = vmul.f32 0.6931472, %v607_v28 }
 0x199   :  { %v611_v31 = vpop.eup %610  ;;  %630 = vlog2.f32 %v609_v30  ;;  %v354_v60 = vsub.f32 0.0, %v343_v46 }
 0x19a   :  { %v613_v32 = vpop.eup %612  ;;  %632 = vlog2.f32 %v611_v31  ;;  %v353_v49 = vsub.f32 0.0, %v341_v37 }
 0x19b   :  { %v615_v35 = vpop.eup %614  ;;  %v339_v50 = vmul.f32 0.6931472, %v613_v32 }
 0x19c   :  { %v617_v38 = vpop.eup %616  ;;  %v289_v39 = vmul.f32 0.6931472, %v615_v35 }
 0x19d   :  { %v619_v40 = vpop.eup %618  ;;  %v297_v42 = vmul.f32 0.6931472, %v617_v38  ;;  %v352_v0 = vsub.f32 0.0, %v339_v50 }
 0x19e   :  { %v621_v43 = vpop.eup %620  ;;  %v359_v44 = vadd.f32 %v351_v33, %v289_v39  ;;  %634 = vlog2.f32 %v619_v40 }
 0x19f   :  { %v623_v47 = vpop.eup %622  ;;  %v363_v48 = vadd.f32 %v355_v36, %v297_v42  ;;  %v349_v4 = vmul.f32 0.6931472, %v621_v43 }
 0x1a0   :  { %v625_v51 = vpop.eup %624  ;;  %v369_v52 = vmul.f32 %v367_v41, %v359_v44  ;;  %v287_v53 = vmul.f32 0.6931472, %v623_v47 }
 0x1a1   :  { %v627_v54 = vpop.eup %626  ;;  %v373_v55 = vmul.f32 %v367_v41, %v363_v48  ;;  %v293_v56 = vmul.f32 0.6931472, %v625_v51  ;;  %v357_v22 = vsub.f32 0.0, %v349_v4 }
 0x1a2   :  { %v629_v57 = vpop.eup %628  ;;  %v504_v58 = vmul.f32 -1.442695, %v369_v52  ;;  %v358_v59 = vadd.f32 %v350_v45, %v287_v53  ;;  %636 = vlog2.f32 %v627_v54 }
 0x1a3   :  { %v631_v61 = vpop.eup %630  ;;  %v508_v62 = vmul.f32 -1.442695, %v373_v55  ;;  %v361_v63 = vadd.f32 %v353_v49, %v293_v56  ;;  %v347_v19 = vmul.f32 0.6931472, %v629_v57 }
 0x1a4   :  { %v633_v1 = vpop.eup %632  ;;  %638 = vpow2.f32 %v504_v58  ;;  %v368_v2 = vmul.f32 %v367_v41, %v358_v59  ;;  %v295_v3 = vmul.f32 0.6931472, %v631_v61 }
 0x1a5   :  { %640 = vpow2.f32 %v508_v62  ;;  %v371_v6 = vmul.f32 %v367_v41, %v361_v63  ;;  %v291_v14 = vmul.f32 0.6931472, %v633_v1  ;;  %v356_v26 = vsub.f32 0.0, %v347_v19 }
 0x1a6   :  { %v503_v15 = vmul.f32 -1.442695, %v368_v2  ;;  %v362_v16 = vadd.f32 %v354_v60, %v295_v3 }
 0x1a7   :  { %v506_v17 = vmul.f32 -1.442695, %v371_v6  ;;  %v360_v18 = vadd.f32 %v352_v0, %v291_v14 }
 0x1a8   :  { %v635_v20 = vpop.eup %634  ;;  %642 = vpow2.f32 %v503_v15  ;;  %v372_v21 = vmul.f32 %v367_v41, %v362_v16 }
 0x1a9   :  { %v370_v23 = vmul.f32 %v367_v41, %v360_v18  ;;  %v301_v24 = vmul.f32 0.6931472, %v635_v20  ;;  %644 = vpow2.f32 %v506_v17 }
 0x1aa   :  { %v507_v25 = vmul.f32 -1.442695, %v372_v21 }
 0x1ab   :  { %v505_v28 = vmul.f32 -1.442695, %v370_v23  ;;  %v365_v29 = vadd.f32 %v357_v22, %v301_v24 }
 0x1ac   :  { %v637_v27 = vpop.eup %636  ;;  %646 = vpow2.f32 %v507_v25 }
 0x1ad   :  { %v299_v30 = vmul.f32 0.6931472, %v637_v27  ;;  %648 = vpow2.f32 %v505_v28  ;;  %v375_v36 = vmul.f32 %v367_v41, %v365_v29 }
 0x1ae   :  { %v639_v31 = vpop.eup %638 }
 0x1af   :  { %v641_v32 = vpop.eup %640  ;;  %v401_v33 = vadd.f32 1.0, %v639_v31  ;;  %v364_v34 = vadd.f32 %v356_v26, %v299_v30  ;;  %v510_v43 = vmul.f32 -1.442695, %v375_v36 }
 0x1b0   :  { %v405_v35 = vadd.f32 1.0, %v641_v32 }
 0x1b1   :  { %650 = vrcp.f32 %v401_v33  ;;  %v374_v37 = vmul.f32 %v367_v41, %v364_v34 }
 0x1b2   :  { %v643_v38 = vpop.eup %642  ;;  %652 = vrcp.f32 %v405_v35 }
 0x1b3   :  { %v400_v39 = vadd.f32 1.0, %v643_v38  ;;  %v509_v40 = vmul.f32 -1.442695, %v374_v37  ;;  %v645_v42 = vpop.eup %644 }
 0x1b4   :  { %v403_v45 = vadd.f32 1.0, %v645_v42 }
 0x1b5   :  { %654 = vrcp.f32 %v400_v39 }
 0x1b6   :  { %v647_v44 = vpop.eup %646  ;;  %656 = vpow2.f32 %v509_v40 }
 0x1b7   :  { %v404_v46 = vadd.f32 1.0, %v647_v44  ;;  %658 = vpow2.f32 %v510_v43  ;;  %v649_v47 = vpop.eup %648 }
 0x1b8   :  { %v402_v50 = vadd.f32 1.0, %v649_v47 }
 0x1b9   :  { %660 = vrcp.f32 %v404_v46 }
 0x1ba   :  { %662 = vrcp.f32 %v403_v45 }
 0x1bb   :  { %v651_v48 = vpop.eup %650  ;;  %664 = vrcp.f32 %v402_v50 }
 0x1bc   :  { %431 = vperm.xlu1 %557, %v651_v48   ;;  %v653_v49 = vpop.eup %652 }
 0x1bf   :  { %v655_v41 = vpop.eup %654 }
 0x1c0   :  { %451 = vperm.xlu1 %557, %v653_v49   ;;  %426 = vperm.xlu0 %556, %v655_v41   ;;  %v657_v51 = vpop.eup %656 }
 0x1c1   :  { %v659_v52 = vpop.eup %658  ;;  %v406_v53 = vadd.f32 1.0, %v657_v51 }
 0x1c2   :  { %v407_v56 = vadd.f32 1.0, %v659_v52 }
 0x1c3   :  { %v661_v54 = vpop.eup %660  ;;  %666 = vrcp.f32 %v406_v53 }
 0x1c4   :  { %446 = vperm.xlu1 %557, %v661_v54   ;;  %v663_v55 = vpop.eup %662  ;;  %668 = vrcp.f32 %v407_v56 }
 0x1c5   :  { %v665_v57 = vpop.eup %664 }
 0x1c8   :  { %441 = vperm.xlu1 %557, %v663_v55  }
 0x1cc   :  { %436 = vperm.xlu1 %557, %v665_v57  }
 0x1cd   :  { %v667_v58 = vpop.eup %666 }
 0x1ce   :  { %v669_v59 = vpop.eup %668 }
 0x1d0   :  { %456 = vperm.xlu1 %557, %v667_v58  }
 0x1d4   :  { %461 = vperm.xlu1 %557, %v669_v59  }
 0x23b   :  { %v432_v60 = vpop.permute.xlu1 %431 }
 0x23c   :  { %v465_v61 = vmul.f32 %v432_v60, %v740_v8 }
 0x23e   :  { %473 = vst.msk [vmem:[%s870_s7 + $0x8] sm:$0xff] %vm46_vm0, %v465_v61 }
 0x23f   :  { %v452_v62 = vpop.permute.xlu1 %451  ;;  %v427_v63 = vpop.permute.xlu0 %426 }
 0x240   :  { %v469_v0 = vmul.f32 %v452_v62, %v745_v9  ;;  %v464_v1 = vmul.f32 %v427_v63, %v726_v5 }
 0x242   :  { %477 = vst.msk [vmem:[%s870_s7 + $0x28] sm:$0xff] %vm46_vm0, %v469_v0  ;;  %472 = vst.msk [vmem:[%s870_s7] sm:$0xff] %vm46_vm0, %v464_v1 }
 0x243   :  { %v447_v8 = vpop.permute.xlu1 %446 }
 0x244   :  { %v468_v2 = vmul.f32 %v447_v8, %v733_v7 }
 0x246   :  { %476 = vst.msk [vmem:[%s870_s7 + $0x20] sm:$0xff] %vm46_vm0, %v468_v2 }
 0x247   :  { %v442_v9 = vpop.permute.xlu1 %441 }
 0x248   :  { %v467_v5 = vmul.f32 %v442_v9, %v766_v12 }
 0x24a   :  { %475 = vst.msk [vmem:[%s870_s7 + $0x18] sm:$0xff] %vm46_vm0, %v467_v5 }
 0x24b   :  { %v437_v3 = vpop.permute.xlu1 %436 }
 0x24c   :  { %v466_v4 = vmul.f32 %v437_v3, %v750_v10 }
 0x24e   :  { %474 = vst.msk [vmem:[%s870_s7 + $0x10] sm:$0xff] %vm46_vm0, %v466_v4 }
 0x24f   :  { %v457_v7 = vpop.permute.xlu1 %456 }
 0x250   :  { %v470_v6 = vmul.f32 %v457_v7, %v755_v11 }
 0x252   :  { %478 = vst.msk [vmem:[%s870_s7 + $0x30] sm:$0xff] %vm46_vm0, %v470_v6 }
 0x253   :  { %v462_v12 = vpop.permute.xlu1 %461 }
 0x254   :  { %v471_v14 = vmul.f32 %v462_v12, %v773_v13 }
 0x256   :  { %479 = vst.msk [vmem:[%s870_s7 + $0x38] sm:$0xff] %vm46_vm0, %v471_v14 }

</bundles_post_ra>
